<compile_context>
chip_gen: v6e
topology: v6e:2x2x1
jax: 0.10.0
libtpu: 0.0.40
codegen_flags: <defaults>
</compile_context>

<pallas_src>
import functools

import jax
import jax.numpy as jnp
from jax.experimental import pallas as pl
from jax.experimental.pallas import tpu as pltpu


def _round_up(n, m):
    return (n + m - 1) // m * m


def _vmem_capacity_bytes():
    """Physical VMEM of the local chip (128 MiB v5e/v6e, 64 MiB v7x)."""
    try:
        info = pltpu.get_tpu_info()
        cap = getattr(info, "vmem_capacity_bytes", None)
        if cap:
            return int(cap)
    except Exception:
        pass
    return 128 << 20


def _clamp_vmem(requested, vmem_cap):
    """Request at least 32 MiB but never more than ~85% of physical VMEM."""
    return int(min(max(int(requested), 32 << 20), int(vmem_cap * 0.85)))


def _pick_chunk(tb, c, vreg_budget_bytes=256 << 10):
    """Largest lane chunk (multiple of 128) keeping the f32 working set of a
    pooling / gating chunk within ~64 vregs (avoids vreg spill stealing the
    vld/vst slots the store pass needs)."""
    per_lane = tb * c * 4
    return max(128, (vreg_budget_bytes // per_lane) // 128 * 128)


# ---------------------------------------------------------------------------
# Main fused kernel: pooling + MLP + sigmoid + gated multiply in one pass.
# Block: x/o = (TB, C, HW) with HW the *full* spatial extent (no padding).
# ---------------------------------------------------------------------------
def _fused_kernel(x_ref, w1_ref, b1_ref, w2t_ref, b2_ref, o_ref, *,
                  chunk, use_mxu):
    TB, C, HW = x_ref.shape

    # ---- spatial sum / max pooling (chunked over lanes to bound vregs) ----
    def stats(start, size):
        xc = x_ref[:, :, pl.ds(start, size)]
        s = jnp.sum(xc.astype(jnp.float32), axis=-1)       # sum in f32
        m = jnp.max(xc, axis=-1).astype(jnp.float32)       # max exact in dtype
        return s, m                                         # each (TB, C)

    if HW <= chunk:
        s, m = stats(0, HW)
    else:
        n_full = HW // chunk
        tail = HW - n_full * chunk

        def body(i, carry):
            s_acc, m_acc = carry
            start = pl.multiple_of(i * chunk, 128)
            s_c, m_c = stats(start, chunk)
            return s_acc + s_c, jnp.maximum(m_acc, m_c)

        init = (jnp.zeros((TB, C), jnp.float32),
                jnp.full((TB, C), -jnp.inf, jnp.float32))
        s, m = jax.lax.fori_loop(0, n_full, body, init, unroll=(n_full <= 8))
        if tail:
            s_t, m_t = stats(n_full * chunk, tail)          # static tail slice
            s = s + s_t
            m = jnp.maximum(m, m_t)

    avg = s * (1.0 / HW)                                    # (TB, C)

    # ---- shared MLP (fc1 -> ReLU -> fc2).  VPU path for small C; MXU path
    # only when C is large enough that the systolic array isn't all padding.
    pooled = jnp.concatenate([avg, m], axis=0)              # (2*TB, C)
    w1 = w1_ref[...]                                        # (Cr, C)
    w2t = w2t_ref[...]                                      # (Cr, C)
    if use_mxu:
        h = jax.lax.dot_general(pooled, w1, (((1,), (1,)), ((), ())),
                                preferred_element_type=jnp.float32)
        h = jnp.maximum(h + b1_ref[...], 0.0)               # (2*TB, Cr)
        o = jnp.dot(h, w2t, preferred_element_type=jnp.float32) + b2_ref[...]
    else:
        h = jnp.sum(pooled[:, None, :] * w1[None, :, :], axis=-1) + b1_ref[...]
        h = jnp.maximum(h, 0.0)                             # (2*TB, Cr)
        o = jnp.sum(h[:, :, None] * w2t[None, :, :], axis=1) + b2_ref[...]
    gate = jax.nn.sigmoid(o[:TB] + o[TB:])                  # (TB, C) f32

    # ---- apply the gate; bf16 I/O multiplies in bf16 (half the VALU/ld/st
    # traffic on v6e/v7x), f32 I/O stays f32.  x is re-read from VMEM so the
    # pooling pass does not pin the whole slab live across the MLP. ----
    compute_dtype = (jnp.bfloat16 if jnp.dtype(o_ref.dtype) == jnp.bfloat16
                     else jnp.float32)
    gate_c = gate.astype(compute_dtype)[:, :, None]         # (TB, C, 1)

    if HW <= chunk:
        o_ref[...] = (gate_c * x_ref[...].astype(compute_dtype)).astype(o_ref.dtype)
    else:
        n_full = HW // chunk
        tail = HW - n_full * chunk
        # Hoisted broadcast (JAX does not CSE broadcast_in_dim per-iteration).
        gate_b = pl.broadcast_to(gate_c, (TB, C, chunk))

        @pl.loop(0, n_full, unroll=(n_full <= 8))
        def _(i):
            start = pl.multiple_of(i * chunk, 128)
            sl = pl.ds(start, chunk)
            o_ref[:, :, sl] = (
                gate_b * x_ref[:, :, sl].astype(compute_dtype)
            ).astype(o_ref.dtype)

        if tail:
            sl = pl.ds(n_full * chunk, tail)                # static tail slice
            o_ref[:, :, sl] = (
                gate_c * x_ref[:, :, sl].astype(compute_dtype)
            ).astype(o_ref.dtype)


# ---------------------------------------------------------------------------
# Fallback path for per-image slabs too big to hold in VMEM (v7x-safe):
# phase 1 pools (sum, max) over HW tiles, phase 2 applies the gate per tile.
# ---------------------------------------------------------------------------
def _pool_kernel(x_ref, pooled_ref, *, hw_true):
    # x block: (1, C, THW); pooled block: (1, 2, C) f32, resident across hw.
    TBp, C, THW = x_ref.shape
    h = pl.program_id(1)

    @pl.when(h == 0)
    def _():
        pooled_ref[:, 0:1, :] = jnp.zeros((TBp, 1, C), jnp.float32)
        pooled_ref[:, 1:2, :] = jnp.full((TBp, 1, C), -jnp.inf, jnp.float32)

    xc = x_ref[...]
    if hw_true % THW != 0:
        # Only needed because the last HW tile over-reads past the array end.
        lane = jax.lax.broadcasted_iota(jnp.int32, (TBp, C, THW), 2) + h * THW
        valid = lane < hw_true
        xf = xc.astype(jnp.float32)
        s = jnp.sum(jnp.where(valid, xf, 0.0), axis=-1)
        m = jnp.max(jnp.where(valid, xf, -jnp.inf), axis=-1)
    else:
        s = jnp.sum(xc.astype(jnp.float32), axis=-1)
        m = jnp.max(xc, axis=-1).astype(jnp.float32)

    pooled_ref[:, 0:1, :] = pooled_ref[:, 0:1, :] + s[:, None, :]
    pooled_ref[:, 1:2, :] = jnp.maximum(pooled_ref[:, 1:2, :], m[:, None, :])


def _gate_kernel(x_ref, gate_ref, o_ref):
    # x/o block: (1, C, THW); gate block: (1, C, 1) f32.
    if jnp.dtype(o_ref.dtype) == jnp.bfloat16:
        g = gate_ref[...].astype(jnp.bfloat16)
        o_ref[...] = (g * x_ref[...]).astype(o_ref.dtype)
    else:
        o_ref[...] = (gate_ref[...] * x_ref[...].astype(jnp.float32)
                      ).astype(o_ref.dtype)


def _hw_tiled_path(x2, w1, b1, w2, b2, *, HW, block_budget_bytes, vmem_cap):
    B, C, _ = x2.shape
    itemsize = jnp.dtype(x2.dtype).itemsize

    thw = block_budget_bytes // (C * itemsize)
    thw = min(thw, _round_up(HW, 128))
    thw = max(thw // 128 * 128, 128)
    n_hw = pl.cdiv(HW, thw)
    tile_bytes = C * thw * itemsize

    pooled = pl.pallas_call(
        functools.partial(_pool_kernel, hw_true=HW),
        out_shape=jax.ShapeDtypeStruct((B, 2, C), jnp.float32),
        grid_spec=pltpu.PrefetchScalarGridSpec(
            num_scalar_prefetch=0,
            grid=(B, n_hw),
            in_specs=[pl.BlockSpec((1, C, thw), lambda b, h: (b, 0, h))],
            out_specs=pl.BlockSpec((1, 2, C), lambda b, h: (b, 0, 0)),
        ),
        compiler_params=pltpu.CompilerParams(
            dimension_semantics=("parallel", "arbitrary"),
            vmem_limit_bytes=_clamp_vmem(2 * tile_bytes + (4 << 20), vmem_cap),
        ),
    )(x2)

    # Tiny (B, C) MLP + sigmoid between the two passes — negligible HBM.
    avg = pooled[:, 0, :] * (1.0 / HW)
    mx = pooled[:, 1, :]

    def mlp(p):
        h = jnp.maximum(p @ w1.T.astype(jnp.float32) + b1, 0.0)
        return h @ w2.T.astype(jnp.float32) + b2

    gate = jax.nn.sigmoid(mlp(avg) + mlp(mx))[:, :, None]   # (B, C, 1) f32

    out = pl.pallas_call(
        _gate_kernel,
        out_shape=jax.ShapeDtypeStruct((B, C, HW), x2.dtype),
        grid_spec=pltpu.PrefetchScalarGridSpec(
            num_scalar_prefetch=0,
            grid=(B, n_hw),
            in_specs=[
                pl.BlockSpec((1, C, thw), lambda b, h: (b, 0, h)),
                pl.BlockSpec((1, C, 1), lambda b, h: (b, 0, 0)),
            ],
            out_specs=pl.BlockSpec((1, C, thw), lambda b, h: (b, 0, h)),
        ),
        compiler_params=pltpu.CompilerParams(
            dimension_semantics=("parallel", "parallel"),
            vmem_limit_bytes=_clamp_vmem(4 * tile_bytes + (4 << 20), vmem_cap),
        ),
    )(x2, gate)
    return out


# ---------------------------------------------------------------------------
# Wrapper
# ---------------------------------------------------------------------------
def channel_attention(x, w1, b1, w2, b2, *, block_budget_bytes=None):
    """x: (B, C, H, W); w1: (Cr, C), b1: (Cr,), w2: (C, Cr), b2: (C,)."""
    B, C, H, W = x.shape
    HW = H * W
    Cr = w1.shape[0]

    vmem_cap = _vmem_capacity_bytes()
    if block_budget_bytes is None:
        # ~1/8 of physical VMEM: 2x(in+out) double-buffered blocks stay <50%.
        block_budget_bytes = max(vmem_cap // 8, 1 << 20)
    # v7x (64 MiB VMEM) has 2 TensorCores: need >=2 grid steps per core.
    min_steps = 4 if vmem_cap <= (64 << 20) else 2

    itemsize = jnp.dtype(x.dtype).itemsize
    per_b = C * HW * itemsize

    x2 = x.reshape(B, C, HW)    # contiguous reshape — no pad, no extra HBM pass

    if per_b > block_budget_bytes:
        # Single image too big for one VMEM block: two-phase HW-tiled path.
        out = _hw_tiled_path(x2, w1, b1, w2, b2, HW=HW,
                             block_budget_bytes=block_budget_bytes,
                             vmem_cap=vmem_cap)
        return out.reshape(B, C, H, W)

    # Batch-group size: biggest block under budget, keeping enough grid steps.
    required_steps = min(min_steps, B)
    TB = 1
    for tb in range(1, B + 1):
        if B % tb:
            continue
        if tb * per_b > block_budget_bytes:
            continue
        if B // tb < required_steps:
            continue
        TB = tb

    chunk = _pick_chunk(TB, C)

    w2t = jnp.transpose(w2)                 # (Cr, C) — tiny one-time transpose
    b1r = b1.reshape(1, Cr)
    b2r = b2.reshape(1, C)

    block_bytes = TB * per_b
    weight_bytes = (w1.size + w2.size + b1.size + b2.size) * 4
    vmem_limit = _clamp_vmem(4 * block_bytes + 2 * weight_bytes + (4 << 20),
                             vmem_cap)

    kernel = functools.partial(_fused_kernel, chunk=chunk, use_mxu=(C >= 256))

    out = pl.pallas_call(
        kernel,
        out_shape=jax.ShapeDtypeStruct((B, C, HW), x.dtype),
        grid_spec=pltpu.PrefetchScalarGridSpec(
            num_scalar_prefetch=0,
            grid=(B // TB,),
            in_specs=[
                pl.BlockSpec((TB, C, HW), lambda b: (b, 0, 0)),   # x
                pl.BlockSpec((Cr, C), lambda b: (0, 0)),          # w1
                pl.BlockSpec((1, Cr), lambda b: (0, 0)),          # b1
                pl.BlockSpec((Cr, C), lambda b: (0, 0)),          # w2^T
                pl.BlockSpec((1, C), lambda b: (0, 0)),           # b2
            ],
            out_specs=pl.BlockSpec((TB, C, HW), lambda b: (b, 0, 0)),
        ),
        compiler_params=pltpu.CompilerParams(
            dimension_semantics=("parallel",),
            vmem_limit_bytes=vmem_limit,
        ),
    )(x2, w1, b1r, w2t, b2r)

    return out.reshape(B, C, H, W)


def channel_attention_ref(x, w1, b1, w2, b2):
    """Pure-JAX reference mirroring the PyTorch forward."""
    avg = jnp.mean(x, axis=(2, 3))
    mx = jnp.max(x, axis=(2, 3))

    def mlp(p):  # p: (B, C)
        h = jnp.maximum(p @ w1.T + b1, 0.0)
        return h @ w2.T + b2

    gate = jax.nn.sigmoid(mlp(avg) + mlp(mx))[:, :, None, None]
    return gate * x


if __name__ == "__main__":
    key = jax.random.PRNGKey(0)

    def make_inputs(k, B, C, H, W, reduction=16):
        Cr = max(C // reduction, 1)
        kx, k1, k2, k3, k4 = jax.random.split(k, 5)
        x = jax.random.normal(kx, (B, C, H, W), dtype=jnp.float32)
        w1 = jax.random.normal(k1, (Cr, C), dtype=jnp.float32) / jnp.sqrt(C)
        b1 = jax.random.normal(k2, (Cr,), dtype=jnp.float32) * 0.1
        w2 = jax.random.normal(k3, (C, Cr), dtype=jnp.float32) / jnp.sqrt(Cr)
        b2 = jax.random.normal(k4, (C,), dtype=jnp.float32) * 0.1
        return x, w1, b1, w2, b2

    def check(args, **kw):
        out = jax.block_until_ready(channel_attention(*args, **kw))
        ref = channel_attention_ref(*args)
        assert out.shape == args[0].shape
        assert jnp.allclose(out, ref, atol=1e-5, rtol=1e-5), "mismatch vs reference"

    k1, k2, k3, k4 = jax.random.split(key, 4)

    # 1) main fused path, lane-aligned H*W (canonical small test shape).
    check(make_inputs(k1, B=2, C=32, H=16, W=16))
    # 2) main fused path, non-128-aligned H*W (no pad / slice HBM passes).
    check(make_inputs(k2, B=2, C=32, H=10, W=10))
    # 3) main fused path with in-kernel lane chunking (H*W > vreg-budget chunk).
    check(make_inputs(k3, B=1, C=32, H=48, W=48))
    # 4) HW-tiled two-phase fallback (forced via a tiny block budget).
    check(make_inputs(k4, B=2, C=32, H=20, W=20), block_budget_bytes=8 << 10)

    print("KERNEL_OK")
</pallas_src>

<mosaic_0001>
module attributes {stable_mosaic.version = 11 : i64} {
  func.func @_fused_kernel(%arg0: i32, %arg1: memref<1x32x256xf32, #tpu.memory_space<vmem>>, %arg2: memref<2x32xf32, #tpu.memory_space<vmem>>, %arg3: memref<1x2xf32, #tpu.memory_space<vmem>>, %arg4: memref<2x32xf32, #tpu.memory_space<vmem>>, %arg5: memref<1x32xf32, #tpu.memory_space<vmem>>, %arg6: memref<1x32x256xf32, #tpu.memory_space<vmem>>) attributes {dimension_semantics = [#tpu.dimension_semantics<parallel>], iteration_bounds = array<i64: 2>, scalar_prefetch = 0 : i64, scratch_operands = 0 : i64, tpu.core_type = #tpu.core_type<tc>, window_params = [{transform_indices = @transform_0, window_bounds = array<i64: 1, 32, 256>}, {pipeline_mode = #tpu.pipeline_mode<synchronous>, transform_indices = @transform_1, window_bounds = array<i64: 2, 32>}, {pipeline_mode = #tpu.pipeline_mode<synchronous>, transform_indices = @transform_2, window_bounds = array<i64: 1, 2>}, {pipeline_mode = #tpu.pipeline_mode<synchronous>, transform_indices = @transform_3, window_bounds = array<i64: 2, 32>}, {pipeline_mode = #tpu.pipeline_mode<synchronous>, transform_indices = @transform_4, window_bounds = array<i64: 1, 32>}, {transform_indices = @transform_5, window_bounds = array<i64: 1, 32, 256>}]} {
    %c0 = arith.constant 0 : index
    %c0_0 = arith.constant 0 : index
    %c0_1 = arith.constant 0 : index
    %0 = vector.load %arg1[%c0, %c0_0, %c0_1] : memref<1x32x256xf32, #tpu.memory_space<vmem>>, vector<1x32x256xf32>
    %cst = arith.constant dense<0.000000e+00> : vector<1x32xf32>
    %1 = vector.multi_reduction <add>, %0, %cst [2] : vector<1x32x256xf32> to vector<1x32xf32>
    %cst_2 = arith.constant dense<0xFF800000> : vector<1x32xf32>
    %2 = vector.multi_reduction <maximumf>, %0, %cst_2 [2] : vector<1x32x256xf32> to vector<1x32xf32>
    %cst_3 = arith.constant 3.906250e-03 : f32
    %3 = vector.broadcast %cst_3 : f32 to vector<1x32xf32>
    %4 = arith.mulf %1, %3 : vector<1x32xf32>
    %5 = tpu.concatenate %4, %2 in 0 : vector<1x32xf32>, vector<1x32xf32> -> vector<2x32xf32>
    %c0_4 = arith.constant 0 : index
    %c0_5 = arith.constant 0 : index
    %6 = vector.load %arg2[%c0_4, %c0_5] : memref<2x32xf32, #tpu.memory_space<vmem>>, vector<2x32xf32>
    %c0_6 = arith.constant 0 : index
    %c0_7 = arith.constant 0 : index
    %7 = vector.load %arg4[%c0_6, %c0_7] : memref<2x32xf32, #tpu.memory_space<vmem>>, vector<2x32xf32>
    %8 = vector.shape_cast %5 : vector<2x32xf32> to vector<2x1x32xf32>
    %9 = vector.shape_cast %6 : vector<2x32xf32> to vector<1x2x32xf32>
    %10 = vector.broadcast %8 : vector<2x1x32xf32> to vector<2x2x32xf32>
    %11 = vector.broadcast %9 : vector<1x2x32xf32> to vector<2x2x32xf32>
    %12 = arith.mulf %10, %11 : vector<2x2x32xf32>
    %cst_8 = arith.constant dense<0.000000e+00> : vector<2x2xf32>
    %13 = vector.multi_reduction <add>, %12, %cst_8 [2] : vector<2x2x32xf32> to vector<2x2xf32>
    %c0_9 = arith.constant 0 : index
    %c0_10 = arith.constant 0 : index
    %14 = vector.load %arg3[%c0_9, %c0_10] : memref<1x2xf32, #tpu.memory_space<vmem>>, vector<1x2xf32>
    %15 = vector.broadcast %14 : vector<1x2xf32> to vector<2x2xf32>
    %16 = arith.addf %13, %15 : vector<2x2xf32>
    %cst_11 = arith.constant 0.000000e+00 : f32
    %17 = vector.broadcast %cst_11 : f32 to vector<2x2xf32>
    %18 = arith.maximumf %16, %17 : vector<2x2xf32>
    %19 = vector.shape_cast %18 : vector<2x2xf32> to vector<2x2x1xf32>
    %20 = vector.shape_cast %7 : vector<2x32xf32> to vector<1x2x32xf32>
    %21 = vector.broadcast %19 : vector<2x2x1xf32> to vector<2x2x32xf32>
    %22 = vector.broadcast %20 : vector<1x2x32xf32> to vector<2x2x32xf32>
    %23 = arith.mulf %21, %22 : vector<2x2x32xf32>
    %cst_12 = arith.constant dense<0.000000e+00> : vector<2x32xf32>
    %24 = vector.multi_reduction <add>, %23, %cst_12 [1] : vector<2x2x32xf32> to vector<2x32xf32>
    %c0_13 = arith.constant 0 : index
    %c0_14 = arith.constant 0 : index
    %25 = vector.load %arg5[%c0_13, %c0_14] : memref<1x32xf32, #tpu.memory_space<vmem>>, vector<1x32xf32>
    %26 = vector.broadcast %25 : vector<1x32xf32> to vector<2x32xf32>
    %27 = arith.addf %24, %26 : vector<2x32xf32>
    %28 = vector.extract_strided_slice %27 {offsets = [0, 0], sizes = [1, 32], strides = [1, 1]} : vector<2x32xf32> to vector<1x32xf32>
    %29 = vector.extract_strided_slice %27 {offsets = [1, 0], sizes = [1, 32], strides = [1, 1]} : vector<2x32xf32> to vector<1x32xf32>
    %30 = arith.addf %28, %29 : vector<1x32xf32>
    %31 = arith.negf %30 : vector<1x32xf32>
    %32 = math.exp %31 : vector<1x32xf32>
    %cst_15 = arith.constant 1.000000e+00 : f32
    %33 = vector.broadcast %cst_15 : f32 to vector<1x32xf32>
    %34 = arith.addf %33, %32 : vector<1x32xf32>
    %35 = arith.divf %33, %34 : vector<1x32xf32>
    %36 = vector.shape_cast %35 : vector<1x32xf32> to vector<1x32x1xf32>
    %c0_16 = arith.constant 0 : index
    %c0_17 = arith.constant 0 : index
    %c0_18 = arith.constant 0 : index
    %37 = vector.load %arg1[%c0_16, %c0_17, %c0_18] : memref<1x32x256xf32, #tpu.memory_space<vmem>>, vector<1x32x256xf32>
    %38 = vector.broadcast %36 : vector<1x32x1xf32> to vector<1x32x256xf32>
    %39 = arith.mulf %38, %37 : vector<1x32x256xf32>
    %c0_19 = arith.constant 0 : index
    %c0_20 = arith.constant 0 : index
    %c0_21 = arith.constant 0 : index
    %40 = vector.load %arg6[%c0_19, %c0_20, %c0_21] : memref<1x32x256xf32, #tpu.memory_space<vmem>>, vector<1x32x256xf32>
    tpu.vector_store %arg6[%c0_19, %c0_20, %c0_21], %39 {strides = array<i32>} : memref<1x32x256xf32, #tpu.memory_space<vmem>>, vector<1x32x256xf32>,
    return
  }
  func.func @transform_0(%arg0: i32) -> (i32, i32, i32) {
    %c0_i32 = arith.constant 0 : i32
    %c0_i32_0 = arith.constant 0 : i32
    %c0_i32_1 = arith.constant 0 : i32
    return %arg0, %c0_i32, %c0_i32_0 : i32, i32, i32
  }
  func.func @transform_1(%arg0: i32) -> (i32, i32) {
    %c0_i32 = arith.constant 0 : i32
    %c0_i32_0 = arith.constant 0 : i32
    %c0_i32_1 = arith.constant 0 : i32
    return %c0_i32, %c0_i32_0 : i32, i32
  }
  func.func @transform_2(%arg0: i32) -> (i32, i32) {
    %c0_i32 = arith.constant 0 : i32
    %c0_i32_0 = arith.constant 0 : i32
    %c0_i32_1 = arith.constant 0 : i32
    return %c0_i32, %c0_i32_0 : i32, i32
  }
  func.func @transform_3(%arg0: i32) -> (i32, i32) {
    %c0_i32 = arith.constant 0 : i32
    %c0_i32_0 = arith.constant 0 : i32
    %c0_i32_1 = arith.constant 0 : i32
    return %c0_i32, %c0_i32_0 : i32, i32
  }
  func.func @transform_4(%arg0: i32) -> (i32, i32) {
    %c0_i32 = arith.constant 0 : i32
    %c0_i32_0 = arith.constant 0 : i32
    %c0_i32_1 = arith.constant 0 : i32
    return %c0_i32, %c0_i32_0 : i32, i32
  }
  func.func @transform_5(%arg0: i32) -> (i32, i32, i32) {
    %c0_i32 = arith.constant 0 : i32
    %c0_i32_0 = arith.constant 0 : i32
    %c0_i32_1 = arith.constant 0 : i32
    return %arg0, %c0_i32, %c0_i32_0 : i32, i32, i32
  }
}

</mosaic_0001>

<bundles_post_ra>
// kernel: tpu_custom_call.1
= control target key start
LH: loop header
LB: loop body
LE: loop exit
PB: predicated region body
PF: predicated region fallthrough
CT: control target
= control target key end

     0   :  { %10 = vsyncpa [#allocation3], 0  ;;  %s1077_s0 = inlined_call_operand.hbm [shape: f32[2,32,256], index: 0, kind: input, shape index: {}]   ;;  %s1078_s1 = inlined_call_operand.hbm [shape: f32[2,32], index: 1, kind: input, shape index: {}]   ;;  %s1079_s2 = inlined_call_operand.vmem [shape: f32[1,2], index: 2, kind: input, shape index: {}]   ;;  %s1080_s3 = inlined_call_operand.vmem [shape: f32[2,32], index: 3, kind: input, shape index: {}]   ;;  %s1081_s4 = inlined_call_operand.vmem [shape: f32[1,32], index: 4, kind: input, shape index: {}]   ;;  %s1082_s5 = inlined_call_operand.hbm [shape: f32[2,32,256], index: 5, kind: output, shape index: {}]  }
   0x1   :  { %12 = vsyncpa [#allocation3 + $0x1], 0 }
   0x2   :  { %13 = vsyncpa [#allocation6], 0 }
   0x3   :  { %14 = vsyncpa [#allocation4], 0 }
   0x4   :  { %16 = vsyncpa [#allocation4 + $0x1], 0  ;;  %s835_s18 = smov 0   ;;  %s837_s19 = smov 0  }
   0x5   :  { %s839_s20 = smov 0   ;;  %s841_s21 = smov 0  }
   0x6 LB: > { %s856_s22 = sadd.s32 4294967295, %s794_s21   ;;  %s582_s23 = sadd.s32 4294967294, %s794_s21   ;;  %s794_s21 = sphi %s841_s21, %s1105_s21   ;;  %s790_s20 = sphi %s839_s20, %s1104_s20   ;;  %s786_s19 = sphi %s837_s19, %s1103_s19   ;;  %s782_s18 = sphi %s835_s18, %s1102_s18  }
   0x7   : > { %s860_s24 = sadd.s32 1, %s794_s21   ;;  %s29_s25 = sadd.s32 1, %s790_s20 }
   0x8   : > { %s26_s26 = ssub.s32 %s794_s21, %s860_s24  ;;  %p36_p0 = scmp.ne.s32.totalorder %s790_s20, %s786_s19 }
   0x9   : > { %p27_p1 = scmp.eq.s32.totalorder %s26_s26, 0  ;;  %p37_p2 = scmp.eq.s32.totalorder %s794_s21, 0 }
   0xa   : > { %p42_p3 = scmp.ne.s32.totalorder %s786_s19, %s782_s18  ;;  %p1083_p4 = scmp.eq.s32.totalorder %s856_s22, 0 }
   0xb   : > { %s872_s27 = scalar_select %p27_p1, %s790_s20, %s29_s25  }
   0xc   : > { %p874_p5 = por %p37_p2, %p36_p0  ;;  %p880_p6 = por %p1083_p4, %p42_p3 }
   0xd   : > { %p150_p7 = scmp.eq.s32.totalorder %s856_s22, 1  ;;  %p156_p8 = scmp.eq.s32.totalorder %s582_s23, 1 }
   0xe   : > { %s1088_s29 = scalar_select %p880_p6, 1, 0 }
   0xf   : > { %p583_p9 = scmp.ge.s32.totalorder %s794_s21, 1  ;;  %p163_p10 = scmp.lt.s32.totalorder %s794_s21, 3 }
  0x10   : > { %p887_p11 = por %p150_p7, %p36_p0  ;;  %p891_p12 = por %p156_p8, %p42_p3 }
  0x11   : > { %p895_p13 = pnand %p583_p9, %p163_p10  ;;  %s796_s8 = smov [#allocation5]  }
  0x12   : > { %s1089_s30 = scalar_select %p887_p11, 1, 0 }
  0x13   : > { %s1090_s6 = scalar_select %p891_p12, 1, 0 }
  0x14   : > { %s1091_s7 = scalar_select %p895_p13, 1, 0 }
  0x15   : > { %p611_p2 = pneg %p895_p13  ;;  %s176_s9 = sshll.u32 %s796_s8, 4  ;;  %s177_s9 = int_to_ptr.vmem [resolvable:$true] %s176_s9 }
  0x16   : > { %p624_p4 = scmp.lt.s32.totalorder %s794_s21, 2  ;;  %p1092_p0 = scmp.eq.s32.totalorder %s856_s22, 0 }
  0x17   : > { %s196_s11 = sand.u32 1, %s790_s20   ;;  %s683_s14 = scalar_lea.vmem %s177_s9, 32 }
  0x18   : > { %p905_p7 = pnand %p611_p2, %p1092_p0  ;;  %p912_p3 = pnand %p624_p4, %p874_p5 }
  0x19   : > { %s586_s13 = sshll.u32 %s196_s11, 6  ;;  %p684_p9 = scmp.ne.s32.totalorder %s177_s9, %s683_s14 }
  0x1a   : > { %p674_p8 = pneg %p905_p7  ;;  %p691_p12 = scmp.lt.s32.totalorder %s177_s9, %s177_s9 }
  0x1b   : > { %p692_p11 = scmp.lt.s32.totalorder %s683_s14, %s683_s14 }
  0x1c   : > { %p686_p10 = pnand %p684_p9, %p674_p8 }
  0x1d   : > { %p693_p2 = por %p692_p11, %p691_p12 }
  0x1e   : > { %p687_p1 = pneg %p686_p10 }
  0x20   : > { %p694_p0 = pnand %p693_p2, %p687_p1 }
  0x22   : > { %697 = shalt.err (!%p694_p0)
}
  0x23   : > { %614 = dma.hbm_to_vmem [thread:$0]  (!%p905_p7), %s1078_s1, 32, %s177_s9, [#allocation6]  }
  0x24   : > { %s601_s17 = sshll.u32 %s794_s21, 10  ;;  %s200_s23 = scalar_lea.vmem [#allocation2], %s586_s13 }
  0x25   : > { %s207_s25 = sshll.u32 %s200_s23, 4  ;;  %s927_s8 = scalar_lea.hbm %s1077_s0, %s601_s17  ;;  %s929_s25 = int_to_ptr.vmem [resolvable:$true] %s207_s25 }
  0x26   : > { %s931_s10 = scalar_lea.sflag [#allocation3], %s196_s11  ;;  %s698_s14 = scalar_lea.hbm %s927_s8, 1024 }
  0x27   : > { %p699_p4 = scmp.ne.s32.totalorder %s927_s8, %s698_s14  ;;  %p700_p5 = pneg %p912_p3 }
  0x28   : > { %s703_s15 = scalar_lea.hbm %s1077_s0, 2048  ;;  %p704_p1 = scmp.lt.s32.totalorder %s927_s8, %s1077_s0 }
  0x29   : > { %p701_p11 = pnand %p700_p5, %p699_p4  ;;  %p705_p7 = scmp.lt.s32.totalorder %s703_s15, %s698_s14 }
  0x2b   : > { %p702_p12 = pneg %p701_p11  ;;  %p706_p8 = por %p705_p7, %p704_p1 }
  0x2d   : > { %p707_p9 = pnand %p706_p8, %p702_p12 }
  0x2f   : > { %710 = shalt.err (!%p707_p9)
}
  0x30   : > { %s711_s11 = scalar_lea.vmem %s929_s25, 1024  ;;  %s797_s23 = smov [#allocation2]  }
  0x31   : > { %p712_p10 = scmp.ne.s32.totalorder %s929_s25, %s711_s11  ;;  %s716_s26 = sshll.u32 %s797_s23, 4  ;;  %s717_s26 = int_to_ptr.vmem [resolvable:$false] %s716_s26 }
  0x32   : > { %s718_s28 = scalar_lea.vmem %s717_s26, 2048  ;;  %p719_p4 = scmp.lt.s32.totalorder %s929_s25, %s717_s26 }
  0x33   : > { %p714_p2 = pnand %p712_p10, %p700_p5  ;;  %p720_p11 = scmp.lt.s32.totalorder %s718_s28, %s711_s11 }
  0x35   : > { %p715_p0 = pneg %p714_p2  ;;  %p721_p6 = por %p720_p11, %p719_p4 }
  0x37   : > { %p722_p13 = pnand %p721_p6, %p715_p0 }
  0x39   : > { %725 = shalt.err (!%p722_p13)
}
  0x3a   : > { %s798_s14 = smov 256   ;;  %s799_s9 = smov 16  }
  0x3b   : > { %618 = dma.hbm_to_vmem [thread:$0]  (!%p912_p3), %s927_s8, 1024, %s929_s25, %s931_s10, %s798_s14, %s798_s14, %s799_s9  }
  0x3c   : > { %p1095_p5 = scmp.ne.s32.totalorder %s1091_s7, 0 }
  0x3d   : > { %s955_s13 = sand.u32 (!%p1095_p5), 1, %s786_s19   ;;  %p1096_p6 = scmp.ne.s32.totalorder (!%p1095_p5), %s1088_s29, 0 }
  0x3e   : > { %219 = sbr.rel (%p1095_p5) target bundleno = 702 (0x2be), region = 40  ;;  %s590_s15 = sshll.u32 (!%p1095_p5), %s955_s13, 6 }
  0x3f   : > { %s222_s16 = scalar_lea.sflag (!%p1095_p5), [#allocation3], %s955_s13  ;;  %s225_s17 = scalar_lea.vmem (!%p1095_p5), [#allocation2], %s590_s15 }
  0x43   : > { %769 = dma.done.wait (%p1096_p6), %s222_s16, 1024  }
  0x44   : > { %771 = vsyncadd (%p1096_p6), %s222_s16, 4294966272  ;;  %p1097_p13 = scmp.eq.s32.totalorder %s856_s22, 0 }
  0x46   : > { %773 = dma.done.wait (%p1097_p13), [#allocation6], 32   ;;  %p1098_p3 = pmov %p1097_p13 }
  0x47   : > { %v969_v0 = vld [vmem:[%s225_s17 + $0x20] sm:$0xff]  ;;  %v971_v1 = vld [vmem:[%s225_s17 + $0x28] sm:$0xff]  ;;  %v979_v5 = vld [vmem:[%s225_s17 + $0x30] sm:$0xff]  ;;  %v296_v16 = vlaneseq  ;;  %v800_v30 = vmov 1966171168   ;;  %vm307_vm0 = vcmask 130112  }
  0x48   : > { %775 = vsyncadd (%p1098_p3), [#allocation6], 4294967264  ;;  %v973_v2 = vld [vmem:[%s225_s17] sm:$0xff]  ;;  %v270_v3 = vadd.f32 %v971_v1, %v969_v0  ;;  %v977_v4 = vld [vmem:[%s225_s17 + $0x8] sm:$0xff]  ;;  %v282_v15 = vmax.f32 %v969_v0, %v971_v1  ;;  %v354_v31 = vunpack.c.l.s4 %v800_v30  ;;  %vm314_vm1 = vcmask 195712   ;;  %s255_s11 = scalar_lea.vmem [#allocation7], %s590_s15 }
  0x49   : > { %v981_v6 = vld [vmem:[%s225_s17 + $0x38] sm:$0xff]  ;;  %v264_v7 = vadd.f32 %v977_v4, %v973_v2  ;;  %v985_v8 = vld [vmem:[%s225_s17 + $0x10] sm:$0xff]  ;;  %v276_v13 = vmax.f32 %v973_v2, %v977_v4  ;;  %v297_v17 = vand.u32 127, %v296_v16  ;;  %v299_v20 = vshrl.u32 %v296_v16, 7  ;;  %v350_v61 = vld [vmem:[#allocation5] sm:$0x3] }
  0x4a   : > { %v987_v9 = vld [vmem:[%s225_s17 + $0x18] sm:$0xff]  ;;  %271 = vadd.xlane.f32.xlu1 %v270_v3  ;;  %v273_v10 = vadd.f32 %v981_v6, %v979_v5  ;;  %v285_v14 = vmax.f32 %v979_v5, %v981_v6  ;;  %v355_v43 = vunpack.c.0.s8 %v354_v31  ;;  %vm321_vm2 = vcmask 261312   ;;  %s499_s23 = sshll.u32 %s255_s11, 4  ;;  %s602_s26 = sshll.u32 %s856_s22, 10  ;;  %s1025_s23 = int_to_ptr.vmem [resolvable:$true] %s499_s23 }
  0x4b   : > { %265 = vadd.xlane.f32.xlu0 %v264_v7  ;;  %v267_v11 = vadd.f32 %v987_v9, %v985_v8  ;;  %v279_v12 = vmax.f32 %v985_v8, %v987_v9  ;;  %v302_v19 = vadd.s32 4294967288, %v297_v17  ;;  %v309_v22 = vadd.s32 4294967280, %v297_v17  ;;  %s1030_s9 = scalar_lea.hbm %s1082_s5, %s602_s26  ;;  %s486_s22 = scalar_lea.sflag [#allocation4], %s955_s13 }
  0x4c   : > { %v300_v25 = vsub.s32 %v297_v17, %v299_v20  ;;  %v316_v27 = vadd.s32 4294967272, %v297_v17  ;;  %vm348_vm3 = vcmask 1040384   ;;  %v358_v52 = vsub.s32 %v355_v43, %v299_v20  ;;  %s726_s15 = scalar_lea.vmem %s1025_s23, 1024  ;;  %p1099_p1 = scmp.ne.s32.totalorder %s1089_s30, 0 }
  0x4d   : > { %v305_v24 = vsub.s32 %v302_v19, %v299_v20  ;;  %v312_v32 = vsub.s32 %v309_v22, %v299_v20  ;;  %v377_v58 = vsub.s32 0, %v299_v20  ;;  %vm387_vm4 = vcmask 254976   ;;  %v351_v22 = vld [vmem:[%s1080_s3] sm:$0x3]  ;;  %p727_p12 = scmp.ne.s32.totalorder %s1025_s23, %s726_s15  ;;  %s802_s16 = smov [#allocation7]  }
  0x4e   : > { %274 = vadd.xlane.f32.xlu1 %v273_v10  ;;  %v319_v37 = vsub.s32 %v316_v27, %v299_v20  ;;  %s730_s17 = sshll.u32 %s802_s16, 4  ;;  %s731_s17 = int_to_ptr.vmem [resolvable:$false] %s730_s17 }
  0x4f   : > { %268 = vadd.xlane.f32.xlu0 %v267_v11  ;;  %p728_p7 = pnand %p727_p12, %p1099_p1  ;;  %s732_s29 = scalar_lea.vmem %s731_s17, 2048 }
  0x50   : > { %p733_p9 = scmp.lt.s32.totalorder %s1025_s23, %s731_s17  ;;  %p734_p10 = scmp.lt.s32.totalorder %s732_s29, %s726_s15 }
  0x51   : > { %p729_p8 = pneg %p728_p7 }
  0x52   : > { %280 = vmax.xlane.f32.xlu1 %v279_v12  ;;  %p735_p2 = por %p734_p10, %p733_p9 }
  0x53   : > { %277 = vmax.xlane.f32.xlu0 %v276_v13  ;;  %v801_v13 = vmov 0  }
  0x54   : > { %666 = vset.pattern.permute.xlu1 %v801_v13  ;;  %667 = vset.pattern.permute.xlu0 %v801_v13  ;;  %p736_p0 = pnand %p735_p2, %p729_p8 }
  0x56   : > { %286 = vmax.xlane.f32.xlu1 %v285_v14  ;;  %v593_v14 = vld [vmem:[%s1079_s2] ss:$0 sm:$0xff] }
  0x57   : > { %283 = vmax.xlane.f32.xlu0 %v282_v15 }
  0xd3   : > { %v272_v18 = vpop.xlane.xlu1 %271 }
  0xd4   : > { %v266_v21 = vpop.xlane.xlu0 %265  ;;  %v290_v33 = vmul.f32 0.00390625, %v272_v18 }
  0xd5   : > { %v288_v26 = vmul.f32 0.00390625, %v266_v21 }
  0xd6   : > { %v313_v44 = vrot.slane %v290_v33, %v312_v32 }
  0xd7   : > { %v275_v23 = vpop.xlane.xlu1 %274  ;;  %v301_v36 = vrot.slane %v288_v26, %v300_v25 }
  0xd8   : > { %v269_v28 = vpop.xlane.xlu0 %268  ;;  %v291_v38 = vmul.f32 0.00390625, %v275_v23 }
  0xd9   : > { %v289_v29 = vmul.f32 0.00390625, %v269_v28 }
  0xda   : > { %v320_v46 = vrot.slane %v291_v38, %v319_v37 }
  0xdb   : > { %v306_v34 = vrot.slane %v289_v29, %v305_v24  ;;  %v281_v35 = vpop.xlane.xlu1 %280 }
  0xdc   : > { %v278_v39 = vpop.xlane.xlu0 %277  ;;  %v335_v41 = vrot.slane %v281_v35, %v305_v24 }
  0xdd   : > { %v308_v40 = vsel %vm307_vm0, %v306_v34, %v301_v36  ;;  %v331_v42 = vrot.slane %v278_v39, %v300_v25 }
  0xde   : > { %v315_v49 = vsel %vm314_vm1, %v313_v44, %v308_v40  ;;  %v594_v40 = vld [vmem:[%s1081_s4] ss:$0 sm:$0xff] }
  0xdf   : > { %v287_v45 = vpop.xlane.xlu1 %286  ;;  %v336_v51 = vsel %vm307_vm0, %v335_v41, %v331_v42  ;;  %v322_v54 = vsel %vm321_vm2, %v320_v46, %v315_v49 }
  0xe0   : > { %v284_v47 = vpop.xlane.xlu0 %283  ;;  %v345_v48 = vrot.slane %v287_v45, %v319_v37 }
  0xe1   : > { %v340_v50 = vrot.slane %v284_v47, %v312_v32 }
  0xe3   : > { %v341_v53 = vsel %vm314_vm1, %v340_v50, %v336_v51 }
  0xe4   : > { %v346_v55 = vsel %vm321_vm2, %v345_v48, %v341_v53 }
  0xe5   : > { %v349_v56 = vsel %vm348_vm3, %v322_v54, %v346_v55 }
  0xe6   : > { %v359_v57 = vrot.slane %v349_v56, %v358_v52 }
  0xe8   : > { %v367_v59 = vrot.slane %v359_v57, %v358_v52  ;;  %v360_v60 = vcombine.high %v359_v57, %v359_v57 }
  0xea   : > { %v378_v62 = vrot.slane %v367_v59, %v377_v58  ;;  %v374_v63 = vrot.slane %v360_v60, %v358_v52 }
  0xec   : > { %v385_v3 = vmul.f32 %v378_v62, %v350_v61  ;;  %v382_v7 = vrot.slane %v374_v63, %v377_v58 }
  0xee   : > { %v388_v10 = vsel %vm387_vm4, %v385_v3, 0.0  ;;  %v386_v11 = vmul.f32 %v382_v7, %v350_v61 }
  0xef   : > { %389 = vadd.xlane.f32.xlu0 %v388_v10 }
  0xf0   : > { %v391_v12 = vsel %vm387_vm4, %v386_v11, 0.0 }
  0xf1   : > { %392 = vadd.xlane.f32.xlu1 %v391_v12 }
 0x105   : > { %401 = vbcast.lane.b32.xlu0 %v593_v14, 256 }
 0x178   : > { %v390_v15 = vpop.xlane.xlu0 %389 }
 0x17a   : > { %v393_v18 = vpop.xlane.xlu1 %392 }
 0x17c   : > { %v402_v16 = vpop.permute.xlu0 %401 }
 0x17d   : > { %v404_v17 = vadd.f32 %v402_v16, %v390_v15  ;;  %v405_v19 = vadd.f32 %v402_v16, %v393_v18 }
 0x17f   : > { %v406_v20 = vmax.f32 %v404_v17, 0.0  ;;  %v407_v21 = vmax.f32 %v405_v19, 0.0 }
 0x181   : > { %410 = vperm.xlu1 %666, %v406_v20  }
 0x185   : > { %415 = vperm.xlu1 %666, %v407_v21  }
 0x1fc   : > { %v411_v23 = vpop.permute.xlu1 %410 }
 0x1fd   : > { %v418_v24 = vmul.f32 %v411_v23, %v351_v22 }
 0x1ff   : > { %v420_v25 = vsel %vm387_vm4, %v418_v24, 0.0 }
 0x200   : > { %v421_v26 = vrot.slane %v420_v25, 4  ;;  %v416_v27 = vpop.permute.xlu1 %415 }
 0x201   : > { %v419_v28 = vmul.f32 %v416_v27, %v351_v22 }
 0x202   : > { %v422_v29 = vadd.f32 %v421_v26, %v420_v25 }
 0x203   : > { %v427_v30 = vsel %vm387_vm4, %v419_v28, 0.0 }
 0x204   : > { %v423_v31 = vrot.slane %v422_v29, 2  ;;  %v428_v32 = vrot.slane %v427_v30, 4 }
 0x206   : > { %v424_v33 = vadd.f32 %v423_v31, %v422_v29  ;;  %v429_v34 = vadd.f32 %v428_v32, %v427_v30 }
 0x208   : > { %v425_v35 = vrot.slane %v424_v33, 1  ;;  %v430_v36 = vrot.slane %v429_v34, 2 }
 0x20a   : > { %v431_v37 = vadd.f32 %v430_v36, %v429_v34  ;;  %v426_v38 = vadd.f32 %v425_v35, %v424_v33 }
 0x20c   : > { %v432_v39 = vrot.slane %v431_v37, 1  ;;  %v441_v42 = vadd.f32 %v594_v40, %v426_v38 }
 0x20e   : > { %v433_v41 = vadd.f32 %v432_v39, %v431_v37 }
 0x210   : > { %v442_v43 = vadd.f32 %v594_v40, %v433_v41 }
 0x212   : > { %v443_v44 = vadd.f32 %v442_v43, %v441_v42 }
 0x214   : > { %v595_v45 = vmul.f32 -1.442695, %v443_v44 }
 0x216   : > { %668 = vpow2.f32 %v595_v45 }
 0x223   : > { %v669_v46 = vpop.eup %668 }
 0x224   : > { %v447_v47 = vadd.f32 1.0, %v669_v46 }
 0x226   : > { %670 = vrcp.f32 %v447_v47 }
 0x233   : > { %v671_v48 = vpop.eup %670 }
 0x234   : > { %v453_v49 = vrot.slane %v671_v48, %v377_v58 }
 0x236   : > { %459 = vbcast.lane.b32.xlu0 %v453_v49, 264  ;;  %455 = vbcast.lane.b32.xlu1 %v453_v49, 256 }
 0x23a   : > { %467 = vbcast.lane.b32.xlu0 %v453_v49, 280  ;;  %463 = vbcast.lane.b32.xlu1 %v453_v49, 272 }
 0x2a8   : > { %v460_v50 = vpop.permute.xlu0 %459  ;;  %v456_v51 = vpop.permute.xlu1 %455 }
 0x2a9   : > { %v471_v52 = vmul.f32 %v460_v50, %v985_v8  ;;  %v472_v53 = vmul.f32 %v460_v50, %v987_v9  ;;  %v469_v54 = vmul.f32 %v456_v51, %v973_v2  ;;  %v470_v55 = vmul.f32 %v456_v51, %v977_v4 }
 0x2ab   : > { %479 = vst [vmem:[%s255_s11 + $0x10] sm:$0xff] %v471_v52  ;;  %480 = vst [vmem:[%s255_s11 + $0x18] sm:$0xff] %v472_v53 }
 0x2ac   : > { %477 = vst [vmem:[%s255_s11] sm:$0xff] %v469_v54  ;;  %478 = vst [vmem:[%s255_s11 + $0x8] sm:$0xff] %v470_v55  ;;  %v468_v56 = vpop.permute.xlu0 %467  ;;  %v464_v57 = vpop.permute.xlu1 %463 }
 0x2ad   : > { %v475_v2 = vmul.f32 %v468_v56, %v979_v5  ;;  %v476_v4 = vmul.f32 %v468_v56, %v981_v6  ;;  %v473_v8 = vmul.f32 %v464_v57, %v969_v0  ;;  %v474_v9 = vmul.f32 %v464_v57, %v971_v1 }
 0x2af   : > { %483 = vst [vmem:[%s255_s11 + $0x30] sm:$0xff] %v475_v2  ;;  %484 = vst [vmem:[%s255_s11 + $0x38] sm:$0xff] %v476_v4 }
 0x2b0   : > { %481 = vst [vmem:[%s255_s11 + $0x20] sm:$0xff] %v473_v8  ;;  %482 = vst [vmem:[%s255_s11 + $0x28] sm:$0xff] %v474_v9 }
 0x2b1   : > { %739 = shalt.err (!%p736_p0)
}
 0x2b2   : > { %s740_s7 = scalar_lea.hbm %s1030_s9, 1024  ;;  %s744_s8 = scalar_lea.hbm %s1082_s5, 2048 }
 0x2b3   : > { %p741_p4 = scmp.ne.s32.totalorder %s1030_s9, %s740_s7  ;;  %p745_p6 = scmp.lt.s32.totalorder %s1030_s9, %s1082_s5 }
 0x2b4   : > { %p746_p13 = scmp.lt.s32.totalorder %s744_s8, %s740_s7 }
 0x2b5   : > { %p742_p11 = pnand %p741_p4, %p1099_p1 }
 0x2b6   : > { %p747_p3 = por %p746_p13, %p745_p6 }
 0x2b7   : > { %p743_p5 = pneg %p742_p11 }
 0x2b9   : > { %p748_p12 = pnand %p747_p3, %p743_p5 }
 0x2bb   : > { %751 = shalt.err (!%p748_p12)
}
 0x2bc   : > { %s803_s26 = smov 256   ;;  %s804_s28 = smov 16  }
 0x2bd   : > { %609 = dma.vmem_to_hbm [thread:$0]  (%p1099_p1), %s1025_s23, 1024, %s1030_s9, %s486_s22, %s803_s26, %s803_s26, %s804_s28  }
 0x2be PF: > { %s514_s14 = sand.u32 1, %s782_s18   ;;  %p1100_p7 = scmp.ne.s32.totalorder %s1090_s6, 0 }
 0x2bf   : > { %p1101_p8 = scmp.ge.s32.totalorder %s794_s21, 2  ;;  %s515_s15 = scalar_lea.sflag [#allocation4], %s514_s14 }
 0x2c1   : > { %p620_p9 = pnand %p1101_p8, %p1100_p7 }
 0x2c3   : > { %p621_p10 = pneg %p620_p9 }
 0x2c5   : > { %777 = dma.done.wait (%p621_p10), %s515_s15, 1024  }
 0x2c6   : > { %779 = vsyncadd (%p621_p10), %s515_s15, 4294966272  ;;  %p19_p2 = scmp.ge.s32.totalorder %s860_s24, 4   ;;  %s1102_s18 = smov %s786_s19 }
 0x2c7   : > { %s1103_s19 = smov %s790_s20  ;;  %s1104_s20 = smov %s872_s27 }
 0x2c8   : > { %s1105_s21 = smov %s860_s24  ;;  %21 = sbr.rel (!%p19_p2) target bundleno = 6 (0x6), region = 89 }
 0x2cd   :  { %520 = vsyncpa [#allocation3], 1 }
 0x2ce   :  { %522 = vsyncpa [#allocation3 + $0x1], 1 }
 0x2cf   :  { %523 = vsyncpa [#allocation6], 1 }
 0x2d0   :  { %524 = vsyncpa [#allocation4], 1 }
 0x2d1   :  { %526 = vsyncpa [#allocation4 + $0x1], 1 }

</bundles_post_ra>
